<compile_context>
chip_gen: v7x
topology: tpu7x:2x2x1
jax: 0.10.0
libtpu: 0.0.40
codegen_flags: <defaults>
</compile_context>

<pallas_src>
import functools
import numpy as np
import jax
import jax.numpy as jnp
from jax import lax
from jax.experimental import pallas as pl
from jax.experimental.pallas import tpu as pltpu

_SIXTH = 1.0 / 6.0


def _hswish(x):
    return x * (jnp.clip(x + 3.0, 0.0, 6.0) * _SIXTH)


def _hsigmoid(x):
    return jnp.clip(x + 3.0, 0.0, 6.0) * _SIXTH


def _pick_batch_block(n, target=8):
    """Images per grid step.

    Large enough to amortize the ~0.35us/step pipeline overhead, but keeps >=2
    grid steps when n >= 2 so both v7x TensorCores get work (the batch axis is
    the only 'parallel' axis).  Must divide n so no batch padding is needed.
    At production spatial sizes, also keep 2*(B*C1 + B*C2 + K*K*C1)*HW*4 bytes
    under the scoped-VMEM default (32 MiB on v6e/v7x).
    """
    if n <= 1:
        return 1
    cap = min(target, max(1, n // 2))
    for b in range(cap, 0, -1):
        if n % b == 0:
            return b
    return 1


# ---------------------------------------------------------------------------
# Fast path: stride == 1 and "same" padding (2*pad == K-1), e.g. the standard
# MobileNet 3x3/pad=1 depthwise block.  Channels on sublanes, spatial on lanes.
# ---------------------------------------------------------------------------
def _ds_same_kernel(*refs, K, pad, W, use_se):
    if use_se:
        (x_ref, mw_ref, dws_ref, dwb_ref,
         sew1_ref, seb1_ref, sew2t_ref, seb2_ref,
         pwwt_ref, pws_ref, pwb_ref, out_ref) = refs
    else:
        (x_ref, mw_ref, dws_ref, dwb_ref,
         pwwt_ref, pws_ref, pwb_ref, out_ref) = refs

    # x_ref    : (B, C1, H*W)     B images, NCHW flattened, spatial lane-dense
    # mw_ref   : (K*K, C1, H*W)   pre-folded halo-mask * depthwise-weight per tap
    # pwwt_ref : (C2, C1)         pointwise weights, output-channel major
    # out_ref  : (B, C2, H*W)     lane-dense flattened-NCHW output
    B, C1, HW = x_ref.shape
    KK = K * K
    center = pad * K + pad          # the (pad, pad) tap: shift 0, mask all-ones

    # Small per-channel params: load once, reused across the B-image loop.
    dws = dws_ref[...]              # (C1, 1)
    dwb = dwb_ref[...]              # (C1, 1)
    pwwt = pwwt_ref[...]            # (C2, C1)
    pws = pws_ref[...]              # (C2, 1)
    pwb = pwb_ref[...]              # (C2, 1)

    for b in range(B):              # static, unrolled
        xf = x_ref[b].astype(jnp.float32)                    # (C1, HW)

        # ---- depthwise KxK "same" conv: lane rolls (XLU) + pre-folded
        #      mask*weight multiplies (VPU).  Center tap seeds acc. ----
        acc = xf * mw_ref[center]
        for t in range(KK):
            if t == center:
                continue
            dy, dx = t // K, t % K
            off = (dy - pad) * W + (dx - pad)                # static tap offset
            shift = (-off) % HW
            acc = acc + pltpu.roll(xf, shift, axis=1) * mw_ref[t]

        # ---- dw BN (folded, eval mode) + hard-swish ----
        y = _hswish(acc * dws + dwb)                         # (C1, HW)

        if use_se:
            # global average pool over the (all valid) spatial lanes
            pooled = jnp.mean(y, axis=1, keepdims=True)      # (C1, 1)
            # SE squeeze: h_j = relu(sum_c pooled_c * w1[c,j] + b1_j)
            h = jnp.sum(sew1_ref[...] * pooled, axis=0, keepdims=True) + seb1_ref[...]
            h = jnp.maximum(h, 0.0)                          # (1, Cr)
            # SE excite: s_c = hsigmoid(sum_j w2[j,c] * h_j + b2_c)
            s = jnp.sum(sew2t_ref[...] * h, axis=1, keepdims=True) + seb2_ref[...]
            y = y * _hsigmoid(s)                             # (C1, HW)

        # ---- pointwise 1x1 conv on the (otherwise idle) MXU ----
        z = jnp.dot(pwwt, y,
                    precision=jax.lax.Precision.HIGHEST,
                    preferred_element_type=jnp.float32)      # (C2, HW)

        # ---- pw BN (folded) + hard-swish, lane-dense unmasked store ----
        z = _hswish(z * pws + pwb)
        out_ref[b] = z.astype(out_ref.dtype)


# ---------------------------------------------------------------------------
# Generic path (stride != 1 or non-"same" padding).
# TODO(synk): not lane-optimized (channels-on-lanes layout, masked stores).
# ---------------------------------------------------------------------------
def _ds_generic_kernel(xp_ref, dww_ref, dws_ref, dwb_ref,
                       sew1_ref, seb1_ref, sew2_ref, seb2_ref,
                       pww_ref, pws_ref, pwb_ref, out_ref, *, stride, use_se):
    Hp, Wp, C1 = xp_ref.shape[1], xp_ref.shape[2], xp_ref.shape[3]
    K = dww_ref.shape[0]
    Ho = (Hp - K) // stride + 1
    Wo = (Wp - K) // stride + 1

    xp = xp_ref[0]                                           # (Hp, Wp, C1)
    dww = dww_ref[...]                                       # (K, K, C1)

    acc = jnp.zeros((Ho, Wo, C1), jnp.float32)
    for dy in range(K):
        for dx in range(K):
            patch = xp[dy:dy + (Ho - 1) * stride + 1:stride,
                       dx:dx + (Wo - 1) * stride + 1:stride, :]
            acc = acc + patch * dww[dy, dx, :]

    y = acc.reshape(Ho * Wo, C1)
    y = _hswish(y * dws_ref[...] + dwb_ref[...])

    if use_se:
        pooled = jnp.mean(y, axis=0, keepdims=True)          # (1, C1)
        h = jnp.dot(pooled, sew1_ref[...],
                    preferred_element_type=jnp.float32) + seb1_ref[...]
        h = jnp.maximum(h, 0.0)
        s = jnp.dot(h, sew2_ref[...],
                    preferred_element_type=jnp.float32) + seb2_ref[...]
        y = y * _hsigmoid(s)

    z = jnp.dot(y, pww_ref[...], preferred_element_type=jnp.float32)
    z = _hswish(z * pws_ref[...] + pwb_ref[...])
    out_ref[0] = z


@functools.partial(jax.jit, static_argnames=("stride", "padding", "use_se"))
def depthwise_separable(x_nchw, params, *, stride=1, padding=1, use_se=True):
    """x_nchw: (N, C1, H, W) float32 (PyTorch NCHW convention)."""
    x = x_nchw.astype(jnp.float32)
    N, C1, H, W = x.shape
    dw_w = params["dw_w"]                                    # (K, K, C1)
    K = dw_w.shape[0]
    pw_w = params["pw_w"]                                    # (C1, C2)
    C2 = pw_w.shape[1]
    dw_scale, dw_bias = params["dw_scale"], params["dw_bias"]    # (C1,)
    pw_scale, pw_bias = params["pw_scale"], params["pw_bias"]    # (C2,)
    if use_se:
        se_w1, se_b1 = params["se_w1"], params["se_b1"]          # (C1,Cr), (Cr,)
        se_w2, se_b2 = params["se_w2"], params["se_b2"]          # (Cr,C1), (C1,)

    same = (stride == 1) and (2 * padding == K - 1)
    if same:
        HW = H * W
        B = _pick_batch_block(N)
        steps = N // B

        # Pre-folded per-tap (halo mask) x (depthwise weight):
        #   mw[t, c, p] = mask[t, p] * dw_w[ty, tx, c]
        # mask is 1.0 where the rolled tap reads a real pixel, 0.0 where it
        # would have read zero padding (or wrapped around a row / the image).
        p = np.arange(HW)
        col = p % W
        mask_np = np.zeros((K * K, HW), np.float32)
        for t in range(K * K):
            dy, dx = t // K, t % K
            off = (dy - padding) * W + (dx - padding)
            ox = dx - padding
            ok = ((p + off >= 0) & (p + off < HW)
                  & (col + ox >= 0) & (col + ox < W))
            mask_np[t] = ok.astype(np.float32)
        masks = jnp.asarray(mask_np)                         # (K*K, HW)
        dww_flat = dw_w.reshape(K * K, C1)                   # (K*K, C1)
        mw = dww_flat[:, :, None] * masks[:, None, :]        # (K*K, C1, HW)

        x_flat = x.reshape(N, C1, HW)                        # metadata-only
        full2 = lambda n: (0, 0)
        full3 = lambda n: (0, 0, 0)

        in_specs = [
            pl.BlockSpec((B, C1, HW), lambda n: (n, 0, 0)),
            pl.BlockSpec((K * K, C1, HW), full3),
            pl.BlockSpec((C1, 1), full2), pl.BlockSpec((C1, 1), full2),
        ]
        operands = [x_flat, mw,
                    dw_scale.reshape(C1, 1), dw_bias.reshape(C1, 1)]
        if use_se:
            Cr = se_w1.shape[1]
            in_specs += [pl.BlockSpec((C1, Cr), full2),
                         pl.BlockSpec((1, Cr), full2),
                         pl.BlockSpec((C1, Cr), full2),
                         pl.BlockSpec((C1, 1), full2)]
            operands += [se_w1, se_b1.reshape(1, Cr),
                         se_w2.T, se_b2.reshape(C1, 1)]
        in_specs += [pl.BlockSpec((C2, C1), full2),
                     pl.BlockSpec((C2, 1), full2),
                     pl.BlockSpec((C2, 1), full2)]
        operands += [pw_w.T, pw_scale.reshape(C2, 1), pw_bias.reshape(C2, 1)]

        kernel = functools.partial(_ds_same_kernel, K=K, pad=padding, W=W,
                                   use_se=use_se)
        out = pl.pallas_call(
            kernel,
            grid=(steps,),
            in_specs=in_specs,
            out_specs=pl.BlockSpec((B, C2, HW), lambda n: (n, 0, 0)),
            out_shape=jax.ShapeDtypeStruct((N, C2, HW), jnp.float32),
            compiler_params=pltpu.CompilerParams(
                dimension_semantics=("parallel",)),
        )(*operands)
        return out.reshape(N, C2, H, W)                      # already NCHW

    # -------- generic path (stride != 1 or non-"same" padding) --------
    if not use_se:
        cr0 = max(C1 // 4, 1)
        se_w1 = jnp.zeros((C1, cr0), jnp.float32)
        se_b1 = jnp.zeros((cr0,), jnp.float32)
        se_w2 = jnp.zeros((cr0, C1), jnp.float32)
        se_b2 = jnp.zeros((C1,), jnp.float32)
    Cr = se_w1.shape[1]

    xn = jnp.transpose(x, (0, 2, 3, 1))                      # NHWC
    xp = jnp.pad(xn, ((0, 0), (padding, padding), (padding, padding), (0, 0)))
    Hp, Wp = H + 2 * padding, W + 2 * padding
    Ho = (Hp - K) // stride + 1
    Wo = (Wp - K) // stride + 1

    kernel = functools.partial(_ds_generic_kernel, stride=stride, use_se=use_se)
    z2 = lambda n: (0, 0)
    z3 = lambda n: (0, 0, 0)
    out = pl.pallas_call(
        kernel,
        grid=(N,),
        in_specs=[
            pl.BlockSpec((1, Hp, Wp, C1), lambda n: (n, 0, 0, 0)),
            pl.BlockSpec((K, K, C1), z3),
            pl.BlockSpec((1, C1), z2), pl.BlockSpec((1, C1), z2),
            pl.BlockSpec((C1, Cr), z2), pl.BlockSpec((1, Cr), z2),
            pl.BlockSpec((Cr, C1), z2), pl.BlockSpec((1, C1), z2),
            pl.BlockSpec((C1, C2), z2),
            pl.BlockSpec((1, C2), z2), pl.BlockSpec((1, C2), z2),
        ],
        out_specs=pl.BlockSpec((1, Ho * Wo, C2), lambda n: (n, 0, 0)),
        out_shape=jax.ShapeDtypeStruct((N, Ho * Wo, C2), jnp.float32),
        compiler_params=pltpu.CompilerParams(dimension_semantics=("parallel",)),
    )(xp, dw_w, dw_scale.reshape(1, C1), dw_bias.reshape(1, C1),
      se_w1, se_b1.reshape(1, Cr), se_w2, se_b2.reshape(1, C1),
      pw_w, pw_scale.reshape(1, C2), pw_bias.reshape(1, C2))
    out = out.reshape(N, Ho, Wo, C2)
    return jnp.transpose(out, (0, 3, 1, 2))


def reference(x_nchw, params, *, stride=1, padding=1, use_se=True):
    """Pure-JAX reference mirroring the PyTorch forward (eval-mode BN)."""
    x = jnp.transpose(x_nchw, (0, 2, 3, 1)).astype(jnp.float32)
    dw_w = params["dw_w"]
    K, _, C1 = dw_w.shape
    rhs = dw_w.reshape(K, K, 1, C1)
    y = lax.conv_general_dilated(
        x, rhs, window_strides=(stride, stride),
        padding=[(padding, padding), (padding, padding)],
        dimension_numbers=("NHWC", "HWIO", "NHWC"),
        feature_group_count=C1)
    y = y * params["dw_scale"] + params["dw_bias"]
    y = _hswish(y)
    if use_se:
        pooled = jnp.mean(y, axis=(1, 2))                    # (N, C1)
        h = jnp.maximum(pooled @ params["se_w1"] + params["se_b1"], 0.0)
        s = _hsigmoid(h @ params["se_w2"] + params["se_b2"])
        y = y * s[:, None, None, :]
    z = jnp.einsum("nhwc,cd->nhwd", y, params["pw_w"],
                   precision=jax.lax.Precision.HIGHEST)
    z = z * params["pw_scale"] + params["pw_bias"]
    z = _hswish(z)
    return jnp.transpose(z, (0, 3, 1, 2))


if __name__ == "__main__":
    # DepthwiseSeparable(num_channels=8, num_filters1=8, num_filters2=16,
    #                    num_groups=8, stride=1, scale=1.0, use_se=True)
    N, C1, H, W = 2, 8, 16, 16
    C2 = 16
    Cr = C1 // 4   # SE reduction = 4

    key = jax.random.PRNGKey(0)
    ks = jax.random.split(key, 16)
    x = jax.random.normal(ks[0], (N, C1, H, W), jnp.float32)

    def bn_fold(kg, kb, km, kv, c, eps=1e-5):
        gamma = jax.random.uniform(kg, (c,), jnp.float32, 0.5, 1.5)
        beta = jax.random.normal(kb, (c,), jnp.float32) * 0.1
        mean = jax.random.normal(km, (c,), jnp.float32) * 0.1
        var = jax.random.uniform(kv, (c,), jnp.float32, 0.5, 1.5)
        scale = gamma / jnp.sqrt(var + eps)
        return scale, beta - mean * scale

    dw_scale, dw_bias = bn_fold(ks[1], ks[2], ks[3], ks[4], C1)
    pw_scale, pw_bias = bn_fold(ks[5], ks[6], ks[7], ks[8], C2)

    params = dict(
        dw_w=jax.random.normal(ks[9], (3, 3, C1), jnp.float32) * 0.3,
        dw_scale=dw_scale, dw_bias=dw_bias,
        se_w1=jax.random.normal(ks[10], (C1, Cr), jnp.float32) * 0.3,
        se_b1=jax.random.normal(ks[11], (Cr,), jnp.float32) * 0.1,
        se_w2=jax.random.normal(ks[12], (Cr, C1), jnp.float32) * 0.3,
        se_b2=jax.random.normal(ks[13], (C1,), jnp.float32) * 0.1,
        pw_w=jax.random.normal(ks[14], (C1, C2), jnp.float32) * 0.3,
        pw_scale=pw_scale, pw_bias=pw_bias,
    )

    # use_se=True (the tested config), N=2 -> B=1, 2 parallel grid steps
    out = depthwise_separable(x, params, stride=1, padding=1, use_se=True)
    out = jax.block_until_ready(out)
    assert out.shape == (N, C2, H, W), out.shape
    ref = reference(x, params, stride=1, padding=1, use_se=True)
    np.testing.assert_allclose(np.asarray(out), np.asarray(ref),
                               atol=5e-4, rtol=5e-4)

    # use_se=False: SE operands are dropped from the pallas_call entirely
    out2 = depthwise_separable(x, params, stride=1, padding=1, use_se=False)
    out2 = jax.block_until_ready(out2)
    ref2 = reference(x, params, stride=1, padding=1, use_se=False)
    np.testing.assert_allclose(np.asarray(out2), np.asarray(ref2),
                               atol=5e-4, rtol=5e-4)

    # Larger batch exercises the multi-image-per-step path (B=4, 2 grid steps)
    xb = jax.random.normal(ks[15], (8, C1, H, W), jnp.float32)
    out3 = depthwise_separable(xb, params, stride=1, padding=1, use_se=True)
    out3 = jax.block_until_ready(out3)
    ref3 = reference(xb, params, stride=1, padding=1, use_se=True)
    np.testing.assert_allclose(np.asarray(out3), np.asarray(ref3),
                               atol=5e-4, rtol=5e-4)

    print("KERNEL_OK")
</pallas_src>

<mosaic_0001>
module attributes {stable_mosaic.version = 11 : i64} {
  func.func @_ds_same_kernel(%arg0: i32, %arg1: memref<1x8x256xf32, #tpu.memory_space<vmem>>, %arg2: memref<9x8x256xf32, #tpu.memory_space<vmem>>, %arg3: memref<8x1xf32, #tpu.memory_space<vmem>>, %arg4: memref<8x1xf32, #tpu.memory_space<vmem>>, %arg5: memref<8x2xf32, #tpu.memory_space<vmem>>, %arg6: memref<1x2xf32, #tpu.memory_space<vmem>>, %arg7: memref<8x2xf32, #tpu.memory_space<vmem>>, %arg8: memref<8x1xf32, #tpu.memory_space<vmem>>, %arg9: memref<16x8xf32, #tpu.memory_space<vmem>>, %arg10: memref<16x1xf32, #tpu.memory_space<vmem>>, %arg11: memref<16x1xf32, #tpu.memory_space<vmem>>, %arg12: memref<1x16x256xf32, #tpu.memory_space<vmem>>) attributes {dimension_semantics = [#tpu.dimension_semantics<parallel>], iteration_bounds = array<i64: 2>, scalar_prefetch = 0 : i64, scratch_operands = 0 : i64, tpu.core_type = #tpu.core_type<tc>, window_params = [{transform_indices = @transform_0, window_bounds = array<i64: 1, 8, 256>}, {pipeline_mode = #tpu.pipeline_mode<synchronous>, transform_indices = @transform_1, window_bounds = array<i64: 9, 8, 256>}, {pipeline_mode = #tpu.pipeline_mode<synchronous>, transform_indices = @transform_2, window_bounds = array<i64: 8, 1>}, {pipeline_mode = #tpu.pipeline_mode<synchronous>, transform_indices = @transform_3, window_bounds = array<i64: 8, 1>}, {pipeline_mode = #tpu.pipeline_mode<synchronous>, transform_indices = @transform_4, window_bounds = array<i64: 8, 2>}, {pipeline_mode = #tpu.pipeline_mode<synchronous>, transform_indices = @transform_5, window_bounds = array<i64: 1, 2>}, {pipeline_mode = #tpu.pipeline_mode<synchronous>, transform_indices = @transform_6, window_bounds = array<i64: 8, 2>}, {pipeline_mode = #tpu.pipeline_mode<synchronous>, transform_indices = @transform_7, window_bounds = array<i64: 8, 1>}, {pipeline_mode = #tpu.pipeline_mode<synchronous>, transform_indices = @transform_8, window_bounds = array<i64: 16, 8>}, {pipeline_mode = #tpu.pipeline_mode<synchronous>, transform_indices = @transform_9, window_bounds = array<i64: 16, 1>}, {pipeline_mode = #tpu.pipeline_mode<synchronous>, transform_indices = @transform_10, window_bounds = array<i64: 16, 1>}, {transform_indices = @transform_11, window_bounds = array<i64: 1, 16, 256>}]} {
    %c0 = arith.constant 0 : index
    %c0_0 = arith.constant 0 : index
    %0 = vector.load %arg3[%c0, %c0_0] : memref<8x1xf32, #tpu.memory_space<vmem>>, vector<8x1xf32>
    %c0_1 = arith.constant 0 : index
    %c0_2 = arith.constant 0 : index
    %1 = vector.load %arg4[%c0_1, %c0_2] : memref<8x1xf32, #tpu.memory_space<vmem>>, vector<8x1xf32>
    %c0_3 = arith.constant 0 : index
    %c0_4 = arith.constant 0 : index
    %2 = vector.load %arg9[%c0_3, %c0_4] : memref<16x8xf32, #tpu.memory_space<vmem>>, vector<16x8xf32>
    %c0_5 = arith.constant 0 : index
    %c0_6 = arith.constant 0 : index
    %3 = vector.load %arg10[%c0_5, %c0_6] : memref<16x1xf32, #tpu.memory_space<vmem>>, vector<16x1xf32>
    %c0_7 = arith.constant 0 : index
    %c0_8 = arith.constant 0 : index
    %4 = vector.load %arg11[%c0_7, %c0_8] : memref<16x1xf32, #tpu.memory_space<vmem>>, vector<16x1xf32>
    %c0_9 = arith.constant 0 : index
    %c0_10 = arith.constant 0 : index
    %c0_11 = arith.constant 0 : index
    %5 = vector.load %arg1[%c0_9, %c0_10, %c0_11] : memref<1x8x256xf32, #tpu.memory_space<vmem>>, vector<1x8x256xf32>
    %6 = vector.shape_cast %5 : vector<1x8x256xf32> to vector<8x256xf32>
    %c4 = arith.constant 4 : index
    %c0_12 = arith.constant 0 : index
    %c0_13 = arith.constant 0 : index
    %7 = vector.load %arg2[%c4, %c0_12, %c0_13] : memref<9x8x256xf32, #tpu.memory_space<vmem>>, vector<1x8x256xf32>
    %8 = vector.shape_cast %7 : vector<1x8x256xf32> to vector<8x256xf32>
    %9 = arith.mulf %6, %8 : vector<8x256xf32>
    %c17_i32 = arith.constant 17 : i32
    %10 = tpu.dynamic_rotate %6 by %c17_i32 dim 1 : vector<8x256xf32>, i32 -> vector<8x256xf32>
    %c0_14 = arith.constant 0 : index
    %c0_15 = arith.constant 0 : index
    %c0_16 = arith.constant 0 : index
    %11 = vector.load %arg2[%c0_14, %c0_15, %c0_16] : memref<9x8x256xf32, #tpu.memory_space<vmem>>, vector<1x8x256xf32>
    %12 = vector.shape_cast %11 : vector<1x8x256xf32> to vector<8x256xf32>
    %13 = arith.mulf %10, %12 : vector<8x256xf32>
    %14 = arith.addf %9, %13 : vector<8x256xf32>
    %c16_i32 = arith.constant 16 : i32
    %15 = tpu.dynamic_rotate %6 by %c16_i32 dim 1 : vector<8x256xf32>, i32 -> vector<8x256xf32>
    %c1 = arith.constant 1 : index
    %c0_17 = arith.constant 0 : index
    %c0_18 = arith.constant 0 : index
    %16 = vector.load %arg2[%c1, %c0_17, %c0_18] : memref<9x8x256xf32, #tpu.memory_space<vmem>>, vector<1x8x256xf32>
    %17 = vector.shape_cast %16 : vector<1x8x256xf32> to vector<8x256xf32>
    %18 = arith.mulf %15, %17 : vector<8x256xf32>
    %19 = arith.addf %14, %18 : vector<8x256xf32>
    %c15_i32 = arith.constant 15 : i32
    %20 = tpu.dynamic_rotate %6 by %c15_i32 dim 1 : vector<8x256xf32>, i32 -> vector<8x256xf32>
    %c2 = arith.constant 2 : index
    %c0_19 = arith.constant 0 : index
    %c0_20 = arith.constant 0 : index
    %21 = vector.load %arg2[%c2, %c0_19, %c0_20] : memref<9x8x256xf32, #tpu.memory_space<vmem>>, vector<1x8x256xf32>
    %22 = vector.shape_cast %21 : vector<1x8x256xf32> to vector<8x256xf32>
    %23 = arith.mulf %20, %22 : vector<8x256xf32>
    %24 = arith.addf %19, %23 : vector<8x256xf32>
    %c1_i32 = arith.constant 1 : i32
    %25 = tpu.dynamic_rotate %6 by %c1_i32 dim 1 : vector<8x256xf32>, i32 -> vector<8x256xf32>
    %c3 = arith.constant 3 : index
    %c0_21 = arith.constant 0 : index
    %c0_22 = arith.constant 0 : index
    %26 = vector.load %arg2[%c3, %c0_21, %c0_22] : memref<9x8x256xf32, #tpu.memory_space<vmem>>, vector<1x8x256xf32>
    %27 = vector.shape_cast %26 : vector<1x8x256xf32> to vector<8x256xf32>
    %28 = arith.mulf %25, %27 : vector<8x256xf32>
    %29 = arith.addf %24, %28 : vector<8x256xf32>
    %c255_i32 = arith.constant 255 : i32
    %30 = tpu.dynamic_rotate %6 by %c255_i32 dim 1 : vector<8x256xf32>, i32 -> vector<8x256xf32>
    %c5 = arith.constant 5 : index
    %c0_23 = arith.constant 0 : index
    %c0_24 = arith.constant 0 : index
    %31 = vector.load %arg2[%c5, %c0_23, %c0_24] : memref<9x8x256xf32, #tpu.memory_space<vmem>>, vector<1x8x256xf32>
    %32 = vector.shape_cast %31 : vector<1x8x256xf32> to vector<8x256xf32>
    %33 = arith.mulf %30, %32 : vector<8x256xf32>
    %34 = arith.addf %29, %33 : vector<8x256xf32>
    %c241_i32 = arith.constant 241 : i32
    %35 = tpu.dynamic_rotate %6 by %c241_i32 dim 1 : vector<8x256xf32>, i32 -> vector<8x256xf32>
    %c6 = arith.constant 6 : index
    %c0_25 = arith.constant 0 : index
    %c0_26 = arith.constant 0 : index
    %36 = vector.load %arg2[%c6, %c0_25, %c0_26] : memref<9x8x256xf32, #tpu.memory_space<vmem>>, vector<1x8x256xf32>
    %37 = vector.shape_cast %36 : vector<1x8x256xf32> to vector<8x256xf32>
    %38 = arith.mulf %35, %37 : vector<8x256xf32>
    %39 = arith.addf %34, %38 : vector<8x256xf32>
    %c240_i32 = arith.constant 240 : i32
    %40 = tpu.dynamic_rotate %6 by %c240_i32 dim 1 : vector<8x256xf32>, i32 -> vector<8x256xf32>
    %c7 = arith.constant 7 : index
    %c0_27 = arith.constant 0 : index
    %c0_28 = arith.constant 0 : index
    %41 = vector.load %arg2[%c7, %c0_27, %c0_28] : memref<9x8x256xf32, #tpu.memory_space<vmem>>, vector<1x8x256xf32>
    %42 = vector.shape_cast %41 : vector<1x8x256xf32> to vector<8x256xf32>
    %43 = arith.mulf %40, %42 : vector<8x256xf32>
    %44 = arith.addf %39, %43 : vector<8x256xf32>
    %c239_i32 = arith.constant 239 : i32
    %45 = tpu.dynamic_rotate %6 by %c239_i32 dim 1 : vector<8x256xf32>, i32 -> vector<8x256xf32>
    %c8 = arith.constant 8 : index
    %c0_29 = arith.constant 0 : index
    %c0_30 = arith.constant 0 : index
    %46 = vector.load %arg2[%c8, %c0_29, %c0_30] : memref<9x8x256xf32, #tpu.memory_space<vmem>>, vector<1x8x256xf32>
    %47 = vector.shape_cast %46 : vector<1x8x256xf32> to vector<8x256xf32>
    %48 = arith.mulf %45, %47 : vector<8x256xf32>
    %49 = arith.addf %44, %48 : vector<8x256xf32>
    %50 = vector.broadcast %0 : vector<8x1xf32> to vector<8x256xf32>
    %51 = arith.mulf %49, %50 : vector<8x256xf32>
    %52 = vector.broadcast %1 : vector<8x1xf32> to vector<8x256xf32>
    %53 = arith.addf %51, %52 : vector<8x256xf32>
    %cst = arith.constant 3.000000e+00 : f32
    %54 = vector.broadcast %cst : f32 to vector<8x256xf32>
    %55 = arith.addf %53, %54 : vector<8x256xf32>
    %cst_31 = arith.constant 0.000000e+00 : f32
    %cst_32 = arith.constant 6.000000e+00 : f32
    %56 = vector.broadcast %cst_31 : f32 to vector<8x256xf32>
    %57 = arith.maximumf %56, %55 : vector<8x256xf32>
    %58 = vector.broadcast %cst_32 : f32 to vector<8x256xf32>
    %59 = arith.minimumf %58, %57 : vector<8x256xf32>
    %cst_33 = arith.constant 0.166666672 : f32
    %60 = vector.broadcast %cst_33 : f32 to vector<8x256xf32>
    %61 = arith.mulf %59, %60 : vector<8x256xf32>
    %62 = arith.mulf %53, %61 : vector<8x256xf32>
    %cst_34 = arith.constant dense<0.000000e+00> : vector<8xf32>
    %63 = vector.multi_reduction <add>, %62, %cst_34 [1] : vector<8x256xf32> to vector<8xf32>
    %64 = vector.shape_cast %63 : vector<8xf32> to vector<8x1xf32>
    %cst_35 = arith.constant 2.560000e+02 : f32
    %65 = vector.broadcast %cst_35 : f32 to vector<8x1xf32>
    %66 = arith.divf %64, %65 : vector<8x1xf32>
    %c0_36 = arith.constant 0 : index
    %c0_37 = arith.constant 0 : index
    %67 = vector.load %arg5[%c0_36, %c0_37] : memref<8x2xf32, #tpu.memory_space<vmem>>, vector<8x2xf32>
    %68 = vector.broadcast %66 : vector<8x1xf32> to vector<8x2xf32>
    %69 = arith.mulf %67, %68 : vector<8x2xf32>
    %cst_38 = arith.constant dense<0.000000e+00> : vector<2xf32>
    %70 = vector.multi_reduction <add>, %69, %cst_38 [0] : vector<8x2xf32> to vector<2xf32>
    %71 = vector.shape_cast %70 : vector<2xf32> to vector<1x2xf32>
    %c0_39 = arith.constant 0 : index
    %c0_40 = arith.constant 0 : index
    %72 = vector.load %arg6[%c0_39, %c0_40] : memref<1x2xf32, #tpu.memory_space<vmem>>, vector<1x2xf32>
    %73 = arith.addf %71, %72 : vector<1x2xf32>
    %cst_41 = arith.constant 0.000000e+00 : f32
    %74 = vector.broadcast %cst_41 : f32 to vector<1x2xf32>
    %75 = arith.maximumf %73, %74 : vector<1x2xf32>
    %c0_42 = arith.constant 0 : index
    %c0_43 = arith.constant 0 : index
    %76 = vector.load %arg7[%c0_42, %c0_43] : memref<8x2xf32, #tpu.memory_space<vmem>>, vector<8x2xf32>
    %77 = vector.broadcast %75 : vector<1x2xf32> to vector<8x2xf32>
    %78 = arith.mulf %76, %77 : vector<8x2xf32>
    %cst_44 = arith.constant dense<0.000000e+00> : vector<8xf32>
    %79 = vector.multi_reduction <add>, %78, %cst_44 [1] : vector<8x2xf32> to vector<8xf32>
    %80 = vector.shape_cast %79 : vector<8xf32> to vector<8x1xf32>
    %c0_45 = arith.constant 0 : index
    %c0_46 = arith.constant 0 : index
    %81 = vector.load %arg8[%c0_45, %c0_46] : memref<8x1xf32, #tpu.memory_space<vmem>>, vector<8x1xf32>
    %82 = arith.addf %80, %81 : vector<8x1xf32>
    %cst_47 = arith.constant 3.000000e+00 : f32
    %83 = vector.broadcast %cst_47 : f32 to vector<8x1xf32>
    %84 = arith.addf %82, %83 : vector<8x1xf32>
    %cst_48 = arith.constant 0.000000e+00 : f32
    %cst_49 = arith.constant 6.000000e+00 : f32
    %85 = vector.broadcast %cst_48 : f32 to vector<8x1xf32>
    %86 = arith.maximumf %85, %84 : vector<8x1xf32>
    %87 = vector.broadcast %cst_49 : f32 to vector<8x1xf32>
    %88 = arith.minimumf %87, %86 : vector<8x1xf32>
    %cst_50 = arith.constant 0.166666672 : f32
    %89 = vector.broadcast %cst_50 : f32 to vector<8x1xf32>
    %90 = arith.mulf %88, %89 : vector<8x1xf32>
    %91 = vector.broadcast %90 : vector<8x1xf32> to vector<8x256xf32>
    %92 = arith.mulf %62, %91 : vector<8x256xf32>
    %cst_51 = arith.constant dense<0.000000e+00> : vector<16x256xf32>
    %93 = tpu.matmul %2, %92, %cst_51 {dimension_numbers = #tpu.dot_dimension_numbers<[1], [0], [0], [1], [0, 0, 1, 1], [], []>, precision = #tpu.contract_precision<fp32>} : vector<16x8xf32>, vector<8x256xf32>, vector<16x256xf32> -> vector<16x256xf32>
    %94 = vector.broadcast %3 : vector<16x1xf32> to vector<16x256xf32>
    %95 = arith.mulf %93, %94 : vector<16x256xf32>
    %96 = vector.broadcast %4 : vector<16x1xf32> to vector<16x256xf32>
    %97 = arith.addf %95, %96 : vector<16x256xf32>
    %cst_52 = arith.constant 3.000000e+00 : f32
    %98 = vector.broadcast %cst_52 : f32 to vector<16x256xf32>
    %99 = arith.addf %97, %98 : vector<16x256xf32>
    %cst_53 = arith.constant 0.000000e+00 : f32
    %cst_54 = arith.constant 6.000000e+00 : f32
    %100 = vector.broadcast %cst_53 : f32 to vector<16x256xf32>
    %101 = arith.maximumf %100, %99 : vector<16x256xf32>
    %102 = vector.broadcast %cst_54 : f32 to vector<16x256xf32>
    %103 = arith.minimumf %102, %101 : vector<16x256xf32>
    %cst_55 = arith.constant 0.166666672 : f32
    %104 = vector.broadcast %cst_55 : f32 to vector<16x256xf32>
    %105 = arith.mulf %103, %104 : vector<16x256xf32>
    %106 = arith.mulf %97, %105 : vector<16x256xf32>
    %c0_56 = arith.constant 0 : index
    %c0_57 = arith.constant 0 : index
    %c0_58 = arith.constant 0 : index
    %107 = vector.load %arg12[%c0_56, %c0_57, %c0_58] : memref<1x16x256xf32, #tpu.memory_space<vmem>>, vector<1x16x256xf32>
    %108 = vector.shape_cast %107 : vector<1x16x256xf32> to vector<16x256xf32>
    %109 = vector.shape_cast %106 : vector<16x256xf32> to vector<1x16x256xf32>
    tpu.vector_store %arg12[%c0_56, %c0_57, %c0_58], %109 {strides = array<i32>} : memref<1x16x256xf32, #tpu.memory_space<vmem>>, vector<1x16x256xf32>,
    return
  }
  func.func @transform_0(%arg0: i32) -> (i32, i32, i32) {
    %c0_i32 = arith.constant 0 : i32
    %c0_i32_0 = arith.constant 0 : i32
    %c0_i32_1 = arith.constant 0 : i32
    return %arg0, %c0_i32, %c0_i32_0 : i32, i32, i32
  }
  func.func @transform_1(%arg0: i32) -> (i32, i32, i32) {
    %c0_i32 = arith.constant 0 : i32
    %c0_i32_0 = arith.constant 0 : i32
    %c0_i32_1 = arith.constant 0 : i32
    %c0_i32_2 = arith.constant 0 : i32
    return %c0_i32, %c0_i32_0, %c0_i32_1 : i32, i32, i32
  }
  func.func @transform_2(%arg0: i32) -> (i32, i32) {
    %c0_i32 = arith.constant 0 : i32
    %c0_i32_0 = arith.constant 0 : i32
    %c0_i32_1 = arith.constant 0 : i32
    return %c0_i32, %c0_i32_0 : i32, i32
  }
  func.func @transform_3(%arg0: i32) -> (i32, i32) {
    %c0_i32 = arith.constant 0 : i32
    %c0_i32_0 = arith.constant 0 : i32
    %c0_i32_1 = arith.constant 0 : i32
    return %c0_i32, %c0_i32_0 : i32, i32
  }
  func.func @transform_4(%arg0: i32) -> (i32, i32) {
    %c0_i32 = arith.constant 0 : i32
    %c0_i32_0 = arith.constant 0 : i32
    %c0_i32_1 = arith.constant 0 : i32
    return %c0_i32, %c0_i32_0 : i32, i32
  }
  func.func @transform_5(%arg0: i32) -> (i32, i32) {
    %c0_i32 = arith.constant 0 : i32
    %c0_i32_0 = arith.constant 0 : i32
    %c0_i32_1 = arith.constant 0 : i32
    return %c0_i32, %c0_i32_0 : i32, i32
  }
  func.func @transform_6(%arg0: i32) -> (i32, i32) {
    %c0_i32 = arith.constant 0 : i32
    %c0_i32_0 = arith.constant 0 : i32
    %c0_i32_1 = arith.constant 0 : i32
    return %c0_i32, %c0_i32_0 : i32, i32
  }
  func.func @transform_7(%arg0: i32) -> (i32, i32) {
    %c0_i32 = arith.constant 0 : i32
    %c0_i32_0 = arith.constant 0 : i32
    %c0_i32_1 = arith.constant 0 : i32
    return %c0_i32, %c0_i32_0 : i32, i32
  }
  func.func @transform_8(%arg0: i32) -> (i32, i32) {
    %c0_i32 = arith.constant 0 : i32
    %c0_i32_0 = arith.constant 0 : i32
    %c0_i32_1 = arith.constant 0 : i32
    return %c0_i32, %c0_i32_0 : i32, i32
  }
  func.func @transform_9(%arg0: i32) -> (i32, i32) {
    %c0_i32 = arith.constant 0 : i32
    %c0_i32_0 = arith.constant 0 : i32
    %c0_i32_1 = arith.constant 0 : i32
    return %c0_i32, %c0_i32_0 : i32, i32
  }
  func.func @transform_10(%arg0: i32) -> (i32, i32) {
    %c0_i32 = arith.constant 0 : i32
    %c0_i32_0 = arith.constant 0 : i32
    %c0_i32_1 = arith.constant 0 : i32
    return %c0_i32, %c0_i32_0 : i32, i32
  }
  func.func @transform_11(%arg0: i32) -> (i32, i32, i32) {
    %c0_i32 = arith.constant 0 : i32
    %c0_i32_0 = arith.constant 0 : i32
    %c0_i32_1 = arith.constant 0 : i32
    return %arg0, %c0_i32, %c0_i32_0 : i32, i32, i32
  }
}

</mosaic_0001>

<bundles_post_ra>
// kernel: mul.8
= control target key start
LH: loop header
LB: loop body
LE: loop exit
PB: predicated region body
PF: predicated region fallthrough
CT: control target
= control target key end

     0   :  { %vm16_vm0 = vcmask 64512   ;;  %s61_s0 = inlined_call_operand.vmem [shape: f32[3,3,8], index: 0, kind: input, shape index: {}]   ;;  %s62_s1 = inlined_call_operand.vmem [shape: f32[9,8], index: 1, kind: output, shape index: {}]  }
   0x1   :  { %v29_v0 = vld [vmem:[%s61_s0 + $0x8] sm:$0xf]  ;;  %v30_v1 = vld [vmem:[%s61_s0 + $0x4] sm:$0xf]  ;;  %v13_v2 = vld [vmem:[%s61_s0] sm:$0xf] }
   0x2   :  { %8 = vst [vmem:[#allocation0 + $0x10] sm:$0xf] %v29_v0  ;;  %12 = vst [vmem:[#allocation0 + $0x8] sm:$0xf] %v30_v1 }
   0x3   :  { %14 = vst [vmem:[#allocation0] sm:$0xf] %v13_v2 }
   0x9   :  { %v19_v4 = vld [vmem:[#allocation0 + $0x8] sm:$0x7]   ;;  %v24_v5 = vld [vmem:[#allocation0 + $0x10] sm:$0x7]  }
   0xa   :  { %v15_v3 = vld [vmem:[#allocation0] sm:$0x7]   ;;  %31 = vst.msk [vmem:[%s62_s1 + $0x3] sm:$0x7] %vm16_vm0, %v19_v4   ;;  %32 = vst.msk [vmem:[%s62_s1 + $0x6] sm:$0x7] %vm16_vm0, %v24_v5  }
   0xb   :  { %17 = vst.msk [vmem:[%s62_s1] sm:$0x7] %vm16_vm0, %v15_v3  }

// kernel: depthwise_separable.1
= control target key start
LH: loop header
LB: loop body
LE: loop exit
PB: predicated region body
PF: predicated region fallthrough
CT: control target
= control target key end

     0   :  { %s1354_s17 = smov 0   ;;  %s1499_s0 = inlined_call_operand.vmem [shape: f32[2,8,256], index: 0, kind: input, shape index: {}]   ;;  %s1500_s1 = inlined_call_operand.vmem [shape: f32[9,8,256], index: 1, kind: input, shape index: {}]   ;;  %s1501_s2 = inlined_call_operand.vmem [shape: f32[8,1], index: 2, kind: input, shape index: {}]   ;;  %s1502_s3 = inlined_call_operand.vmem [shape: f32[8,1], index: 3, kind: input, shape index: {}]   ;;  %s1503_s4 = inlined_call_operand.vmem [shape: f32[8,2], index: 4, kind: input, shape index: {}]   ;;  %s1504_s5 = inlined_call_operand.vmem [shape: f32[1,2], index: 5, kind: input, shape index: {}]   ;;  %s1505_s6 = inlined_call_operand.vmem [shape: f32[8,2], index: 6, kind: input, shape index: {}]   ;;  %s1506_s7 = inlined_call_operand.vmem [shape: f32[8,1], index: 7, kind: input, shape index: {}]   ;;  %s1507_s8 = inlined_call_operand.vmem [shape: f32[16,8], index: 8, kind: input, shape index: {}]   ;;  %s1508_s9 = inlined_call_operand.vmem [shape: f32[16,1], index: 9, kind: input, shape index: {}]   ;;  %s1509_s10 = inlined_call_operand.vmem [shape: f32[16,1], index: 10, kind: input, shape index: {}]   ;;  %s1510_s11 = inlined_call_operand.vmem [shape: f32[2,16,256], index: 11, kind: output, shape index: {}]  }
   0x1 LB: > { %s1207_s18 = sadd.s32 4294967295, %s1282_s17   ;;  %p1211_p0 = scmp.ge.s32.totalorder %s1282_s17, 1  ;;  %s1282_s17 = sphi %s1354_s17, %s21_s17  }
   0x2   : > { %p337_p1 = scmp.lt.s32.totalorder %s1282_s17, 3 }
   0x4   : > { %p338_p2 = pnand %p1211_p0, %p337_p1 }
   0x5   : > { %p377_p3 = scmp.lt.s32.totalorder (!%p338_p2), %s1207_s18, 1  ;;  %v1284_v0 = vmov (!%p338_p2), 0   ;;  %s1285_s23 = smov (!%p338_p2), 16   ;;  %v387_v3 = vld [vmem:[%s1501_s2] sm:$0xff] (!%p338_p2)  ;;  %v406_v9 = vlaneseq (!%p338_p2)  ;;  %v1217_v17 = vld [vmem:[%s1500_s1 + $0x48] sm:$0xff] (!%p338_p2)  ;;  %v1218_v28 = vld [vmem:[%s1500_s1 + $0x10] sm:$0xff] (!%p338_p2) }
   0x6   : > { %341 = sbr.rel (%p338_p2) target bundleno = 896 (0x380), region = 64  ;;  %1274 = vset.pattern.permute.xlu0 (!%p338_p2), %v1284_v0  ;;  %1275 = vset.pattern.permute.xlu1 (!%p338_p2), %v1284_v0  ;;  %s1286_s24 = smov (!%p338_p2), 17   ;;  %v388_v4 = vld [vmem:[%s1502_s3] sm:$0xff] (!%p338_p2)  ;;  %v412_v19 = vld [vmem:[%s1500_s1 + $0x8] sm:$0xff] (!%p338_p2)  ;;  %v1219_v29 = vld [vmem:[%s1500_s1 + $0x18] sm:$0xff] (!%p338_p2)  ;;  %vm546_vm8 = vcmask (!%p338_p2), 15360  }
   0x7   : > { %s1287_s25 = smov (!%p338_p2), 15   ;;  %s1288_s26 = smov (!%p338_p2), 1   ;;  %v1375_v12 = vand.u32 (!%p338_p2), 127, %v406_v9  ;;  %v1216_v15 = vld [vmem:[%s1500_s1 + $0x40] sm:$0xff] (!%p338_p2)  ;;  %v1221_v39 = vld [vmem:[%s1500_s1 + $0x28] sm:$0xff] (!%p338_p2)  ;;  %v1222_v42 = vld [vmem:[%s1500_s1 + $0x30] sm:$0xff] (!%p338_p2) }
   0x8   : > { %s1289_s27 = smov (!%p338_p2), 127   ;;  %s1290_s28 = smov (!%p338_p2), 113   ;;  %v411_v18 = vld [vmem:[%s1500_s1] sm:$0xff] (!%p338_p2)  ;;  %v1223_v43 = vld [vmem:[%s1500_s1 + $0x38] sm:$0xff] (!%p338_p2)  ;;  %v1224_v51 = vld [vmem:[%s1500_s1 + $0x50] sm:$0xff] (!%p338_p2)  ;;  %vm579_vm9 = vcmask (!%p338_p2), 64512  }
   0x9   : > { %s1291_s29 = smov (!%p338_p2), 112   ;;  %s1292_s13 = smov (!%p338_p2), 111   ;;  %vm408_vm0 = vcmp.lt.s32.totalorder (!%p338_p2), %v1375_v12, 17  ;;  %vm421_vm1 = vcmp.lt.s32.totalorder (!%p338_p2), %v1375_v12, 16  ;;  %vm435_vm2 = vcmp.lt.s32.totalorder (!%p338_p2), %v1375_v12, 15  ;;  %vm449_vm3 = vcmp.lt.s32.totalorder (!%p338_p2), %v1375_v12, 1 }
   0xa   : > { %v1220_v38 = vld [vmem:[%s1500_s1 + $0x20] sm:$0xff] (!%p338_p2)  ;;  %vm463_vm4 = vcmp.lt.s32.totalorder (!%p338_p2), %v1375_v12, 127  ;;  %vm477_vm5 = vcmp.lt.s32.totalorder (!%p338_p2), %v1375_v12, 113  ;;  %v1225_v52 = vld [vmem:[%s1500_s1 + $0x58] sm:$0xff] (!%p338_p2)  ;;  %vm491_vm6 = vcmp.lt.s32.totalorder (!%p338_p2), %v1375_v12, 112  ;;  %v1227_v59 = vld [vmem:[%s1500_s1 + $0x68] sm:$0xff] (!%p338_p2) }
   0xb   : > { %v1226_v58 = vld [vmem:[%s1500_s1 + $0x60] sm:$0xff] (!%p338_p2)  ;;  %vm505_vm7 = vcmp.lt.s32.totalorder (!%p338_p2), %v1375_v12, 111 }
   0xd   : > { %s1512_s18 = smov (!%p377_p3, %s1207_s18), 1 }
   0xe   : > { %s1234_s19 = sshll.u32 %s1512_s18, 4 }
   0xf   : > { %s381_s22 = scalar_lea.vmem %s1499_s0, %s1234_s19 }
  0x10   : > { %v395_v1 = vld [vmem:[%s381_s22] sm:$0xff]  ;;  %v396_v2 = vld [vmem:[%s381_s22 + $0x8] sm:$0xff] }
  0x11   : > { %417 = vrot.lane.b32.xlu1 %v395_v1, %s1285_s23  ;;  %402 = vrot.lane.b32.xlu0 %v395_v1, %s1286_s24  ;;  %v401_v23 = vmul.f32 %v1217_v17, %v396_v2  ;;  %v400_v24 = vmul.f32 %v1216_v15, %v395_v1 }
  0x15   : > { %419 = vrot.lane.b32.xlu1 %v396_v2, %s1285_s23  ;;  %404 = vrot.lane.b32.xlu0 %v396_v2, %s1286_s24  ;;  %s1235_s23 = sshll.u32 %s1512_s18, 5 }
  0x19   : > { %433 = vrot.lane.b32.xlu1 %v396_v2, %s1287_s25  ;;  %431 = vrot.lane.b32.xlu0 %v395_v1, %s1287_s25 }
  0x1d   : > { %447 = vrot.lane.b32.xlu1 %v396_v2, %s1288_s26  ;;  %445 = vrot.lane.b32.xlu0 %v395_v1, %s1288_s26  ;;  %s386_s26 = scalar_lea.vmem %s1510_s11, %s1235_s23 }
  0x21   : > { %461 = vrot.lane.b32.xlu1 %v396_v2, %s1289_s27  ;;  %459 = vrot.lane.b32.xlu0 %v395_v1, %s1289_s27 }
  0x25   : > { %475 = vrot.lane.b32.xlu1 %v396_v2, %s1290_s28  ;;  %473 = vrot.lane.b32.xlu0 %v395_v1, %s1290_s28 }
  0x29   : > { %489 = vrot.lane.b32.xlu1 %v396_v2, %s1291_s29  ;;  %487 = vrot.lane.b32.xlu0 %v395_v1, %s1291_s29 }
  0x2d   : > { %501 = vrot.lane.b32.xlu1 %v395_v1, %s1292_s13  ;;  %517 = vperm.xlu0 %1274, %v387_v3   ;;  %v1228_v3 = vld [vmem:[%s1500_s1 + $0x70] sm:$0xff] }
  0x31   : > { %503 = vrot.lane.b32.xlu1 %v396_v2, %s1292_s13  ;;  %524 = vperm.xlu0 %1274, %v388_v4   ;;  %v1229_v4 = vld [vmem:[%s1500_s1 + $0x78] sm:$0xff] }
  0x83   : > { %v418_v5 = vpop.permute.xlu1 %417  ;;  %v403_v6 = vpop.permute.xlu0 %402 }
  0x87   : > { %v420_v7 = vpop.permute.xlu1 %419  ;;  %v405_v8 = vpop.permute.xlu0 %404 }
  0x88   : > { %v409_v20 = vsel %vm408_vm0, %v403_v6, %v405_v8  ;;  %v410_v21 = vsel %vm408_vm0, %v405_v8, %v403_v6  ;;  %v422_v30 = vsel %vm421_vm1, %v418_v5, %v420_v7  ;;  %v423_v31 = vsel %vm421_vm1, %v420_v7, %v418_v5 }
  0x89   : > { %v413_v25 = vmul.f32 %v411_v18, %v410_v21  ;;  %v414_v26 = vmul.f32 %v412_v19, %v409_v20  ;;  %v427_v32 = vmul.f32 %v1218_v28, %v423_v31  ;;  %v428_v33 = vmul.f32 %v1219_v29, %v422_v30 }
  0x8b   : > { %v434_v10 = vpop.permute.xlu1 %433  ;;  %v432_v11 = vpop.permute.xlu0 %431  ;;  %v415_v34 = vadd.f32 %v413_v25, %v400_v24  ;;  %v416_v35 = vadd.f32 %v414_v26, %v401_v23 }
  0x8c   : > { %v436_v40 = vsel %vm435_vm2, %v432_v11, %v434_v10  ;;  %v437_v41 = vsel %vm435_vm2, %v434_v10, %v432_v11 }
  0x8d   : > { %v430_v46 = vadd.f32 %v428_v33, %v416_v35  ;;  %v429_v47 = vadd.f32 %v427_v32, %v415_v34  ;;  %v441_v48 = vmul.f32 %v1220_v38, %v437_v41  ;;  %v442_v49 = vmul.f32 %v1221_v39, %v436_v40 }
  0x8f   : > { %v448_v13 = vpop.permute.xlu1 %447  ;;  %v446_v14 = vpop.permute.xlu0 %445  ;;  %v443_v62 = vadd.f32 %v441_v48, %v429_v47  ;;  %v444_v63 = vadd.f32 %v442_v49, %v430_v46 }
  0x90   : > { %v450_v44 = vsel %vm449_vm3, %v446_v14, %v448_v13  ;;  %v451_v45 = vsel %vm449_vm3, %v448_v13, %v446_v14  ;;  %v1230_v13 = vld [vmem:[%s1500_s1 + $0x80] sm:$0xff]  ;;  %v1231_v14 = vld [vmem:[%s1500_s1 + $0x88] sm:$0xff] }
  0x91   : > { %v455_v55 = vmul.f32 %v1222_v42, %v451_v45  ;;  %v456_v56 = vmul.f32 %v1223_v43, %v450_v44  ;;  %v544_v45 = vld [vmem:[%s1503_s4] sm:$0xff] }
  0x93   : > { %v462_v16 = vpop.permute.xlu1 %461  ;;  %v460_v22 = vpop.permute.xlu0 %459  ;;  %v457_v7 = vadd.f32 %v455_v55, %v443_v62  ;;  %v458_v8 = vadd.f32 %v456_v56, %v444_v63  ;;  %v559_v55 = vshrl.u32 %v406_v9, 7  ;;  %v554_v56 = vld [vmem:[%s1504_s5] sm:$0x1] }
  0x94   : > { %v464_v53 = vsel %vm463_vm4, %v460_v22, %v462_v16  ;;  %v465_v54 = vsel %vm463_vm4, %v462_v16, %v460_v22  ;;  %v566_v9 = vld [vmem:[%s1506_s7] sm:$0xff] }
  0x95   : > { %v469_v0 = vmul.f32 %v1224_v51, %v464_v53  ;;  %v470_v1 = vmul.f32 %v1225_v52, %v465_v54 }
  0x97   : > { %v476_v27 = vpop.permute.xlu1 %475  ;;  %v474_v36 = vpop.permute.xlu0 %473  ;;  %v471_v17 = vadd.f32 %v469_v0, %v457_v7  ;;  %v472_v18 = vadd.f32 %v470_v1, %v458_v8  ;;  %v393_v7 = vld [vmem:[%s1509_s10] sm:$0xff]  ;;  %v1293_v8 = vmov 0.0  }
  0x98   : > { %v478_v60 = vsel %vm477_vm5, %v474_v36, %v476_v27  ;;  %v479_v61 = vsel %vm477_vm5, %v476_v27, %v474_v36  ;;  %652 = vmatprep.mubr.f32.mxu1 %v1293_v8  ;;  %915 = vmatprep.mubr.f32.mxu0 %v1293_v8 }
  0x99   : > { %v483_v10 = vmul.f32 %v1226_v58, %v478_v60  ;;  %v484_v11 = vmul.f32 %v1227_v59, %v479_v61  ;;  %v560_v59 = vsub.s32 0, %v559_v55  ;;  %v557_v61 = vld [vmem:[%s1505_s6] sm:$0xff] }
  0x9b   : > { %v490_v37 = vpop.permute.xlu1 %489  ;;  %v488_v57 = vpop.permute.xlu0 %487  ;;  %v485_v21 = vadd.f32 %v483_v10, %v471_v17  ;;  %v486_v22 = vadd.f32 %v484_v11, %v472_v18  ;;  %v391_v10 = vld [vmem:[%s1508_s9] sm:$0xff]  ;;  %v392_v11 = vld [vmem:[%s1508_s9 + $0x8] sm:$0xff] }
  0x9c   : > { %v492_v5 = vsel %vm491_vm6, %v488_v57, %v490_v37  ;;  %v493_v6 = vsel %vm491_vm6, %v490_v37, %v488_v57 }
  0x9d   : > { %v497_v19 = vmul.f32 %v1228_v3, %v492_v5  ;;  %v498_v20 = vmul.f32 %v1229_v4, %v493_v6 }
  0x9f   : > { %v502_v50 = vpop.permute.xlu1 %501  ;;  %v499_v25 = vadd.f32 %v497_v19, %v485_v21  ;;  %v500_v26 = vadd.f32 %v498_v20, %v486_v22 }
  0xa3   : > { %v504_v2 = vpop.permute.xlu1 %503 }
  0xa4   : > { %v506_v15 = vsel %vm505_vm7, %v502_v50, %v504_v2  ;;  %v507_v16 = vsel %vm505_vm7, %v504_v2, %v502_v50 }
  0xa5   : > { %v511_v23 = vmul.f32 %v1230_v13, %v506_v15  ;;  %v512_v24 = vmul.f32 %v1231_v14, %v507_v16  ;;  %v394_v13 = vld [vmem:[%s1509_s10 + $0x8] sm:$0xff]  ;;  %v389_v14 = vld [vmem:[%s1507_s8] sm:$0xff] }
  0xa6   : > { %v581_v15 = vsel %vm579_vm9, %v389_v14, 0  ;;  %v390_v16 = vld [vmem:[%s1507_s8 + $0x8] sm:$0xff] }
  0xa7   : > { %v514_v28 = vadd.f32 %v512_v24, %v500_v26  ;;  %v513_v29 = vadd.f32 %v511_v23, %v499_v25  ;;  %v653_v17 = vand.u32 4294901760, %v581_v15  ;;  %v584_v18 = vsel %vm579_vm9, %v390_v16, 0 }
  0xa8   : > { %v664_v20 = vand.u32 4294901760, %v584_v18 }
  0xa9   : > { %v654_v19 = vsub.f32 %v581_v15, %v653_v17 }
  0xaa   : > { %v665_v22 = vsub.f32 %v584_v18, %v664_v20 }
  0xab   : > { %v655_v21 = vand.u32 4294901760, %v654_v19 }
  0xac   : > { %v518_v27 = vpop.permute.xlu0 %517  ;;  %v666_v24 = vand.u32 4294901760, %v665_v22 }
  0xad   : > { %v520_v30 = vmul.f32 %v518_v27, %v513_v29  ;;  %v521_v31 = vmul.f32 %v518_v27, %v514_v28  ;;  %v656_v23 = vsub.f32 %v654_v19, %v655_v21 }
  0xb0   : > { %v525_v32 = vpop.permute.xlu0 %524 }
  0xb1   : > { %v527_v33 = vadd.f32 %v525_v32, %v520_v30  ;;  %v528_v34 = vadd.f32 %v525_v32, %v521_v31  ;;  %v657_v30 = vand.u32 4294901760, %v656_v23  ;;  %v667_v31 = vsub.f32 %v665_v22, %v666_v24 }
  0xb3   : > { %v529_v12 = vadd.f32 3.0, %v527_v33  ;;  %v530_v35 = vadd.f32 3.0, %v528_v34 }
  0xb5   : > { %v531_v36 = vmax.f32 %v529_v12, 0.0  ;;  %v532_v37 = vmax.f32 %v530_v35, 0.0  ;;  %v668_v35 = vand.u32 4294901760, %v667_v31 }
  0xb7   : > { %v533_v38 = vmin.f32 %v531_v36, 6.0  ;;  %v534_v39 = vmin.f32 %v532_v37, 6.0 }
  0xb9   : > { %v535_v40 = vmul.f32 0.16666667, %v533_v38  ;;  %v536_v41 = vmul.f32 0.16666667, %v534_v39 }
  0xbb   : > { %v537_v42 = vmul.f32 %v535_v40, %v527_v33  ;;  %v538_v43 = vmul.f32 %v536_v41, %v528_v34 }
  0xbd   : > { %v539_v44 = vadd.f32 %v538_v43, %v537_v42 }
  0xbf   : > { %540 = vadd.xlane.f32.xlu1 %v539_v44 }
  0xd0   : > { %1102 = vperm.xlu1 %1275, %v391_v10  }
  0xd4   : > { %1107 = vperm.xlu1 %1275, %v392_v11  }
  0xd8   : > { %1121 = vperm.xlu1 %1275, %v394_v13  }
 0x14c   : > { %v541_v46 = vpop.xlane.xlu1 %540 }
 0x14d   : > { %v543_v47 = vmul.f32 0.00390625, %v541_v46 }
 0x14f   : > { %v545_v48 = vmul.f32 %v544_v45, %v543_v47 }
 0x150   : > { %v1103_v40 = vpop.permute.xlu1 %1102 }
 0x151   : > { %v547_v49 = vsel %vm546_vm8, %v545_v48, 0.0 }
 0x152   : > { %v548_v50 = vrot.slane %v547_v49, 4 }
 0x154   : > { %v549_v51 = vadd.f32 %v548_v50, %v547_v49  ;;  %v1108_v47 = vpop.permute.xlu1 %1107 }
 0x156   : > { %v550_v52 = vrot.slane %v549_v51, 2 }
 0x158   : > { %v551_v53 = vadd.f32 %v550_v52, %v549_v51 }
 0x15a   : > { %v552_v54 = vrot.slane %v551_v53, 1 }
 0x15c   : > { %v553_v57 = vadd.f32 %v552_v54, %v551_v53 }
 0x15e   : > { %v555_v58 = vadd.f32 %v554_v56, %v553_v57 }
 0x160   : > { %v556_v60 = vmax.f32 %v555_v58, 0.0 }
 0x162   : > { %v561_v62 = vrot.slane %v556_v60, %v560_v59 }
 0x164   : > { %v562_v63 = vmul.f32 %v561_v62, %v557_v61 }
 0x166   : > { %v563_v0 = vsel %vm546_vm8, %v562_v63, 0.0  ;;  %v1122_v63 = vpop.permute.xlu1 %1121 }
 0x167   : > { %564 = vadd.xlane.f32.xlu0 %v563_v0 }
 0x1f4   : > { %v565_v1 = vpop.xlane.xlu0 %564 }
 0x1f5   : > { %v567_v2 = vadd.f32 %v566_v9, %v565_v1 }
 0x1f7   : > { %v568_v3 = vadd.f32 3.0, %v567_v2 }
 0x1f9   : > { %v569_v4 = vmax.f32 %v568_v3, 0.0 }
 0x1fb   : > { %v570_v5 = vmin.f32 %v569_v4, 6.0 }
 0x1fd   : > { %v571_v6 = vmul.f32 0.16666667, %v570_v5 }
 0x1ff   : > { %574 = vperm.xlu0 %1274, %v571_v6  }
 0x203   : > { %1116 = vperm.xlu0 %1274, %v393_v7  }
 0x27e   : > { %v575_v25 = vpop.permute.xlu0 %574 }
 0x27f   : > { %v577_v26 = vmul.f32 %v575_v25, %v537_v42  ;;  %v578_v27 = vmul.f32 %v575_v25, %v538_v43 }
 0x281   : > { %v586_v28 = vand.u32 4294901760, %v578_v27  ;;  %v588_v29 = vand.u32 4294901760, %v577_v26 }
 0x282   : > { %v1117_v48 = vpop.permute.xlu0 %1116 }
 0x283   : > { %v676_v32 = vsub.f32 %v578_v27, %v586_v28  ;;  %v682_v33 = vsub.f32 %v577_v26, %v588_v29  ;;  %587 = vmatprep.subr.mxu1 %v586_v28  ;;  %850 = vmatprep.subr.mxu0 %v586_v28 }
 0x284   : > { %589 = vmatpush1.msra.mxu1 %v588_v29  ;;  %852 = vmatpush1.msra.mxu0 %v588_v29 }
 0x285   : > { %658 = vmatmul.mubr.f32.vlgmr.msra.gmra.mrb[0].mxu1 %v657_v30  ;;  %919 = vmatmul.mubr.f32.vlgmr.msra.gmra.mrb[0].mxu0 %v655_v21  ;;  %v677_v34 = vand.u32 4294901760, %v676_v32  ;;  %v683_v12 = vand.u32 4294901760, %v682_v33 }
 0x286   : > { %663 = vmatprep.mubr.f32.mxu1 %v1293_v8  ;;  %924 = vmatprep.mubr.f32.mxu0 %v1293_v8 }
 0x287   : > { %937 = vmatprep.subr.mxu0 %v677_v34  ;;  %v678_v36 = vsub.f32 %v676_v32, %v677_v34  ;;  %v684_v37 = vsub.f32 %v682_v33, %v683_v12 }
 0x288   : > { %941 = vmatpush1.msra.mxu0 %v683_v12 }
 0x289   : > { %669 = vmatmul.mubr.f32.gmra.mrb[2].mxu1 %v668_v35  ;;  %928 = vmatmul.mubr.f32.gmra.mrb[2].mxu0 %v666_v24  ;;  %v679_v38 = vand.u32 4294901760, %v678_v36  ;;  %v685_v39 = vand.u32 4294901760, %v684_v37 }
 0x28a   : > { %1020 = vmatprep.subr.mxu0 %v586_v28  ;;  %749 = vmatprep.mubr.f32.mxu1 %v1293_v8 }
 0x28b   : > { %680 = vmatprep.subr.mxu1 %v679_v38  ;;  %1004 = vmatprep.mubr.f32.mxu0 %v1293_v8 }
 0x28c   : > { %686 = vmatpush1.msra.mxu1 %v685_v39 }
 0x28d   : > { %751 = vmatmul.mubr.f32.vlgmr.msra.gmra.mrb[0].mxu1 %v653_v17  ;;  %766 = vmatprep.subr.mxu1 %v676_v32 }
 0x28e   : > { %1006 = vmatmul.mubr.f32.vlgmr.msra.gmra.mrb[0].mxu0 %v653_v17  ;;  %769 = vmatpush1.msra.mxu1 %v682_v33 }
 0x28f   : > { %1022 = vmatpush1.msra.mxu0 %v588_v29  ;;  %756 = vmatprep.mubr.f32.mxu1 %v1293_v8 }
 0x290   : > { %1011 = vmatprep.mubr.f32.mxu0 %v1293_v8 }
 0x291   : > { %758 = vmatmul.mubr.f32.gmra.mrb[2].mxu1 %v664_v20 }
 0x292   : > { %1013 = vmatmul.mubr.f32.gmra.mrb[2].mxu0 %v664_v20  ;;  %832 = vmatprep.mubr.f32.mxu1 %v1293_v8 }
 0x293   : > { %1085 = vmatprep.mubr.f32.mxu0 %v1293_v8 }
 0x295   : > { %835 = vmatmul.mubr.f32.vlgmr.msra.gmra.mrb[0].mxu1 %v654_v19 }
 0x296   : > { %1087 = vmatmul.mubr.f32.vlgmr.msra.gmra.mrb[0].mxu0 %v653_v17  ;;  %840 = vmatprep.mubr.f32.mxu1 %v1293_v8 }
 0x297   : > { %1092 = vmatprep.mubr.f32.mxu0 %v1293_v8 }
 0x299   : > { %843 = vmatmul.mubr.f32.gmra.mrb[2].mxu1 %v665_v22 }
 0x29a   : > { %1094 = vmatmul.mubr.f32.gmra.mrb[2].mxu0 %v664_v20 }
 0x368   : > { %v836_v41 = vpop.f32.mrb[0].mxu1 }
 0x369   : > { %v1088_v42 = vpop.f32.mrb[0].mxu0  ;;  %v838_v43 = vpop.f32.mrb[1].mxu1 }
 0x36a   : > { %v1236_v44 = vadd.f32 %v1088_v42, %v836_v41  ;;  %v1090_v45 = vpop.f32.mrb[1].mxu0 }
 0x36b   : > { %v1237_v46 = vadd.f32 %v1090_v45, %v838_v43 }
 0x36c   : > { %v1110_v49 = vmul.f32 %v1236_v44, %v1103_v40  ;;  %v844_v50 = vpop.f32.mrb[2].mxu1 }
 0x36d   : > { %v1111_v51 = vmul.f32 %v1237_v46, %v1103_v40  ;;  %v1095_v52 = vpop.f32.mrb[2].mxu0  ;;  %v846_v53 = vpop.f32.mrb[3].mxu1 }
 0x36e   : > { %v1124_v54 = vadd.f32 %v1117_v48, %v1110_v49  ;;  %v1238_v55 = vadd.f32 %v1095_v52, %v844_v50  ;;  %v1097_v56 = vpop.f32.mrb[3].mxu0 }
 0x36f   : > { %v1125_v57 = vadd.f32 %v1117_v48, %v1111_v51  ;;  %v1239_v58 = vadd.f32 %v1097_v56, %v846_v53 }
 0x370   : > { %v1128_v59 = vadd.f32 3.0, %v1124_v54  ;;  %v1112_v60 = vmul.f32 %v1238_v55, %v1108_v47 }
 0x371   : > { %v1129_v61 = vadd.f32 3.0, %v1125_v57  ;;  %v1113_v62 = vmul.f32 %v1239_v58, %v1108_v47 }
 0x372   : > { %v1132_v0 = vmax.f32 %v1128_v59, 0.0  ;;  %v1126_v9 = vadd.f32 %v1122_v63, %v1112_v60 }
 0x373   : > { %v1133_v1 = vmax.f32 %v1129_v61, 0.0  ;;  %v1127_v2 = vadd.f32 %v1122_v63, %v1113_v62 }
 0x374   : > { %v1136_v3 = vmin.f32 %v1132_v0, 6.0  ;;  %v1130_v4 = vadd.f32 3.0, %v1126_v9 }
 0x375   : > { %v1137_v5 = vmin.f32 %v1133_v1, 6.0  ;;  %v1131_v6 = vadd.f32 3.0, %v1127_v2 }
 0x376   : > { %v1140_v7 = vmul.f32 0.16666667, %v1136_v3  ;;  %v1134_v8 = vmax.f32 %v1130_v4, 0.0 }
 0x377   : > { %v1141_v10 = vmul.f32 0.16666667, %v1137_v5  ;;  %v1135_v11 = vmax.f32 %v1131_v6, 0.0 }
 0x378   : > { %v1144_v13 = vmul.f32 %v1140_v7, %v1124_v54  ;;  %v1138_v14 = vmin.f32 %v1134_v8, 6.0 }
 0x379   : > { %v1145_v15 = vmul.f32 %v1141_v10, %v1125_v57  ;;  %v1139_v16 = vmin.f32 %v1135_v11, 6.0 }
 0x37a   : > { %1148 = vst [vmem:[%s386_s26] sm:$0xff] %v1144_v13  ;;  %v1142_v17 = vmul.f32 0.16666667, %v1138_v14 }
 0x37b   : > { %1149 = vst [vmem:[%s386_s26 + $0x8] sm:$0xff] %v1145_v15  ;;  %v1143_v18 = vmul.f32 0.16666667, %v1139_v16 }
 0x37c   : > { %v1146_v19 = vmul.f32 %v1142_v17, %v1126_v9 }
 0x37d   : > { %v1147_v20 = vmul.f32 %v1143_v18, %v1127_v2 }
 0x37e   : > { %1150 = vst [vmem:[%s386_s26 + $0x10] sm:$0xff] %v1146_v19 }
 0x37f   : > { %1151 = vst [vmem:[%s386_s26 + $0x18] sm:$0xff] %v1147_v20 }
 0x380 PF: > { %s21_s17 = sadd.s32 1, %s1282_s17  }
 0x381   : > { %p18_p4 = scmp.ge.s32.totalorder %s21_s17, 4  }
 0x383   :  { %20 = sbr.rel (!%p18_p4) target bundleno = 1 (0x1), region = 102 }

</bundles_post_ra>
